<compile_context>
chip_gen: v6e
topology: v6e:2x2x1
jax: 0.10.0
libtpu: 0.0.40
codegen_flags: <defaults>
</compile_context>

<pallas_src>
import numpy as np
import jax
import jax.numpy as jnp
from jax.experimental import pallas as pl
from jax.experimental.pallas import tpu as pltpu

BN_EPS = 1e-5
GELU_ALPHA = 1.702


def _round_up(v, m):
    return ((v + m - 1) // m) * m


def conv_tower_kernel(x_ref, w_ref, o_ref, act_ref):
    """One ConvBlock per grid step; act_ref is the VMEM-resident activation.

    x_ref:   [C_pad, M]      input (channels on sublanes, positions on lanes)
    w_ref:   [C_pad, C_pad]  layer r's zero-padded Conv1d(k=1) weight [Cout,Cin]
    o_ref:   [C_pad, M]      final tower output (written only on last layer)
    act_ref: [C_pad, M]      persistent VMEM scratch carrying activations
    """
    r = pl.program_id(0)

    @pl.when(r == 0)
    def _():
        act_ref[...] = x_ref[...]

    a = act_ref[...]

    # GELU as defined in the torch module: sigmoid(1.702*x) * x   (VPU + EUP)
    y = a * jax.nn.sigmoid(GELU_ALPHA * a)

    # kernel_size=1 Conv1d (no bias): W[Cout,Cin] @ Y[Cin,M]        (MXU)
    # Output last dim is M (lane-dense); no in-kernel transpose needed.
    z = jnp.dot(w_ref[...], y, preferred_element_type=jnp.float32)

    # BatchNorm1d, training mode: per-channel mean / biased variance over all
    # (batch, length) positions, gamma=1, beta=0.  Cross-lane reduce (XLU).
    m_inv = 1.0 / z.shape[-1]
    mean = jnp.sum(z, axis=-1, keepdims=True) * m_inv
    zc = z - mean
    var = jnp.sum(zc * zc, axis=-1, keepdims=True) * m_inv
    out = zc * jax.lax.rsqrt(var + BN_EPS)

    act_ref[...] = out

    @pl.when(r == pl.num_programs(0) - 1)
    def _():
        o_ref[...] = out.astype(o_ref.dtype)


def conv_tower_forward(x_ncl, weights):
    """ConvTower forward.  x_ncl: [B, C, L] (PyTorch NCL). Returns [B, C_out, L]."""
    B, C_in, L = x_ncl.shape
    repeat = len(weights)
    M = B * L

    chan = [C_in] + [int(w.shape[0]) for w in weights]
    c_pad = _round_up(max(chan), 8)          # sublane-aligned uniform width

    # Stack + zero-pad the per-layer conv weights to [repeat, c_pad, c_pad].
    w_stack = np.zeros((repeat, c_pad, c_pad), np.float32)
    for r, w in enumerate(weights):
        co, ci = w.shape
        w_stack[r, :co, :ci] = np.asarray(w, dtype=np.float32)
    w_stack = jnp.asarray(w_stack)

    # NCL -> channels-on-sublanes / positions-on-lanes: [c_pad, M].
    x_cm = jnp.transpose(x_ncl, (1, 0, 2)).reshape(C_in, M).astype(jnp.float32)
    if c_pad > C_in:
        x_cm = jnp.pad(x_cm, ((0, c_pad - C_in), (0, 0)))

    # Scheduling hints.
    flops = int(2 * repeat * c_pad * c_pad * M)
    transcendentals = int(repeat * c_pad * M)
    bytes_accessed = int(4 * (2 * c_pad * M + repeat * c_pad * c_pad))

    # VMEM budget: x block + resident activation scratch + output block
    # + double-buffered weight blocks, with headroom for in-kernel temporaries.
    # Capped below v7x's 64 MiB physical VMEM.
    bytes_resident = 4 * (3 * c_pad * M + 2 * c_pad * c_pad)
    vmem_limit = int(min(48 * 2**20, max(6 * bytes_resident, 16 * 2**20)))

    out_cm = pl.pallas_call(
        conv_tower_kernel,
        out_shape=jax.ShapeDtypeStruct((c_pad, M), jnp.float32),
        grid=(repeat,),
        in_specs=[
            pl.BlockSpec((c_pad, M), lambda r: (0, 0)),          # resident input
            pl.BlockSpec((None, c_pad, c_pad), lambda r: (r, 0, 0)),  # layer weight
        ],
        out_specs=pl.BlockSpec((c_pad, M), lambda r: (0, 0)),
        scratch_shapes=[pltpu.VMEM((c_pad, M), jnp.float32)],
        compiler_params=pltpu.CompilerParams(
            dimension_semantics=("arbitrary",),   # layer axis is sequential
            vmem_limit_bytes=vmem_limit),
        cost_estimate=pl.CostEstimate(
            flops=flops,
            transcendentals=transcendentals,
            bytes_accessed=bytes_accessed),
    )(x_cm, w_stack)

    c_out = int(weights[-1].shape[0])
    out = out_cm[:c_out].reshape(c_out, B, L)
    return jnp.transpose(out, (1, 0, 2))         # -> [B, C_out, L]


def make_conv_tower_weights(key, n_filters_init, n_filters_end, repeat,
                            divisible_by=1):
    """Deterministic weights matching ConvTower.__init__ channel schedule."""
    def _round(v):
        return int(np.round(v / divisible_by) * divisible_by)

    assert repeat > 1
    mult = np.exp(np.log(n_filters_end / n_filters_init) / (repeat - 1))
    weights = []
    f_in = f_out = float(n_filters_init)
    for _ in range(repeat):
        cin, cout = _round(f_in), _round(f_out)
        key, sub = jax.random.split(key)
        # kaiming_normal_(mode='fan_out'), kernel_size=1 -> fan_out = cout
        std = float(np.sqrt(2.0 / cout))
        w = jax.random.normal(sub, (cout, cin), dtype=jnp.float32) * std
        weights.append(w)
        f_in = f_out
        f_out = f_out * mult
    return weights


def conv_tower_reference(x_ncl, weights):
    """Pure-JAX reference for the same forward (no Pallas)."""
    B, C, L = x_ncl.shape
    cur = jnp.transpose(x_ncl, (0, 2, 1)).reshape(B * L, C).astype(jnp.float32)
    for w in weights:
        y = cur * jax.nn.sigmoid(GELU_ALPHA * cur)
        z = y @ w.T
        mean = jnp.mean(z, axis=0, keepdims=True)
        var = jnp.mean((z - mean) ** 2, axis=0, keepdims=True)
        cur = (z - mean) / jnp.sqrt(var + BN_EPS)
    c_out = cur.shape[-1]
    return jnp.transpose(cur.reshape(B, L, c_out), (0, 2, 1))


if __name__ == "__main__":
    # Small shapes: batch=2, channels=n_filters_init=8, length=128
    # (length chosen so M = batch*length = 256 keeps the lane axis dense),
    # tower: 8 -> 16 -> 32 filters (repeat=3, n_filters_end=32).
    key = jax.random.PRNGKey(0)
    k_x, k_w = jax.random.split(key)

    B, C_IN, L = 2, 8, 128
    x = jax.random.normal(k_x, (B, C_IN, L), dtype=jnp.float32)

    weights = make_conv_tower_weights(
        k_w, n_filters_init=C_IN, n_filters_end=32, repeat=3, divisible_by=1)

    out = conv_tower_forward(x, weights)
    out = jax.block_until_ready(out)

    ref = conv_tower_reference(x, weights)
    np.testing.assert_allclose(np.asarray(out), np.asarray(ref),
                               rtol=1e-4, atol=1e-4)
    assert out.shape == (B, 32, L)
    print("KERNEL_OK")
</pallas_src>

<mosaic_0001>
module attributes {stable_mosaic.version = 11 : i64} {
  func.func @conv_tower_kernel(%arg0: i32, %arg1: memref<32x256xf32, #tpu.memory_space<vmem>>, %arg2: memref<1x32x32xf32, #tpu.memory_space<vmem>>, %arg3: memref<32x256xf32, #tpu.memory_space<vmem>>, %arg4: memref<32x256xf32, #tpu.memory_space<vmem>>) attributes {dimension_semantics = [#tpu.dimension_semantics<arbitrary>], iteration_bounds = array<i64: 3>, scalar_prefetch = 0 : i64, scratch_operands = 1 : i64, tpu.core_type = #tpu.core_type<tc>, window_params = [{pipeline_mode = #tpu.pipeline_mode<synchronous>, transform_indices = @transform_0, window_bounds = array<i64: 32, 256>}, {transform_indices = @transform_1, window_bounds = array<i64: 1, 32, 32>}, {pipeline_mode = #tpu.pipeline_mode<synchronous>, transform_indices = @transform_2, window_bounds = array<i64: 32, 256>}]} {
    %c0_i32 = arith.constant 0 : i32
    %0 = arith.cmpi eq, %arg0, %c0_i32 : i32
    %1 = arith.extui %0 : i1 to i32
    %c0_i32_0 = arith.constant 0 : i32
    %2 = arith.cmpi ne, %1, %c0_i32_0 : i32
    scf.if %2 {
      %c0_15 = arith.constant 0 : index
      %c0_16 = arith.constant 0 : index
      %35 = vector.load %arg1[%c0_15, %c0_16] : memref<32x256xf32, #tpu.memory_space<vmem>>, vector<32x256xf32>
      %c0_17 = arith.constant 0 : index
      %c0_18 = arith.constant 0 : index
      %36 = vector.load %arg4[%c0_17, %c0_18] : memref<32x256xf32, #tpu.memory_space<vmem>>, vector<32x256xf32>
      tpu.vector_store %arg4[%c0_17, %c0_18], %35 {strides = array<i32>} : memref<32x256xf32, #tpu.memory_space<vmem>>, vector<32x256xf32>,
    } else {
    }
    %c0 = arith.constant 0 : index
    %c0_1 = arith.constant 0 : index
    %3 = vector.load %arg4[%c0, %c0_1] : memref<32x256xf32, #tpu.memory_space<vmem>>, vector<32x256xf32>
    %cst = arith.constant 1.702000e+00 : f32
    %4 = vector.broadcast %cst : f32 to vector<32x256xf32>
    %5 = arith.mulf %4, %3 : vector<32x256xf32>
    %6 = arith.negf %5 : vector<32x256xf32>
    %7 = math.exp %6 : vector<32x256xf32>
    %cst_2 = arith.constant 1.000000e+00 : f32
    %8 = vector.broadcast %cst_2 : f32 to vector<32x256xf32>
    %9 = arith.addf %8, %7 : vector<32x256xf32>
    %10 = arith.divf %8, %9 : vector<32x256xf32>
    %11 = arith.mulf %3, %10 : vector<32x256xf32>
    %c0_3 = arith.constant 0 : index
    %c0_4 = arith.constant 0 : index
    %c0_5 = arith.constant 0 : index
    %12 = vector.load %arg2[%c0_3, %c0_4, %c0_5] : memref<1x32x32xf32, #tpu.memory_space<vmem>>, vector<1x32x32xf32>
    %13 = vector.shape_cast %12 : vector<1x32x32xf32> to vector<32x32xf32>
    %cst_6 = arith.constant dense<0.000000e+00> : vector<32x256xf32>
    %14 = tpu.matmul %13, %11, %cst_6 {dimension_numbers = #tpu.dot_dimension_numbers<[1], [0], [0], [1], [0, 0, 1, 1], [], []>} : vector<32x32xf32>, vector<32x256xf32>, vector<32x256xf32> -> vector<32x256xf32>
    %cst_7 = arith.constant dense<0.000000e+00> : vector<32xf32>
    %15 = vector.multi_reduction <add>, %14, %cst_7 [1] : vector<32x256xf32> to vector<32xf32>
    %16 = vector.shape_cast %15 : vector<32xf32> to vector<32x1xf32>
    %cst_8 = arith.constant 3.906250e-03 : f32
    %17 = vector.broadcast %cst_8 : f32 to vector<32x1xf32>
    %18 = arith.mulf %16, %17 : vector<32x1xf32>
    %19 = vector.broadcast %18 : vector<32x1xf32> to vector<32x256xf32>
    %20 = arith.subf %14, %19 : vector<32x256xf32>
    %21 = arith.mulf %20, %20 : vector<32x256xf32>
    %cst_9 = arith.constant dense<0.000000e+00> : vector<32xf32>
    %22 = vector.multi_reduction <add>, %21, %cst_9 [1] : vector<32x256xf32> to vector<32xf32>
    %23 = vector.shape_cast %22 : vector<32xf32> to vector<32x1xf32>
    %cst_10 = arith.constant 3.906250e-03 : f32
    %24 = vector.broadcast %cst_10 : f32 to vector<32x1xf32>
    %25 = arith.mulf %23, %24 : vector<32x1xf32>
    %cst_11 = arith.constant 9.99999974E-6 : f32
    %26 = vector.broadcast %cst_11 : f32 to vector<32x1xf32>
    %27 = arith.addf %25, %26 : vector<32x1xf32>
    %28 = math.rsqrt %27 : vector<32x1xf32>
    %29 = vector.broadcast %28 : vector<32x1xf32> to vector<32x256xf32>
    %30 = arith.mulf %20, %29 : vector<32x256xf32>
    %c0_12 = arith.constant 0 : index
    %c0_13 = arith.constant 0 : index
    %31 = vector.load %arg4[%c0_12, %c0_13] : memref<32x256xf32, #tpu.memory_space<vmem>>, vector<32x256xf32>
    tpu.vector_store %arg4[%c0_12, %c0_13], %30 {strides = array<i32>} : memref<32x256xf32, #tpu.memory_space<vmem>>, vector<32x256xf32>,
    %c2_i32 = arith.constant 2 : i32
    %32 = arith.cmpi eq, %arg0, %c2_i32 : i32
    %33 = arith.extui %32 : i1 to i32
    %c0_i32_14 = arith.constant 0 : i32
    %34 = arith.cmpi ne, %33, %c0_i32_14 : i32
    scf.if %34 {
      %c0_15 = arith.constant 0 : index
      %c0_16 = arith.constant 0 : index
      %35 = vector.load %arg3[%c0_15, %c0_16] : memref<32x256xf32, #tpu.memory_space<vmem>>, vector<32x256xf32>
      tpu.vector_store %arg3[%c0_15, %c0_16], %30 {strides = array<i32>} : memref<32x256xf32, #tpu.memory_space<vmem>>, vector<32x256xf32>,
    } else {
    }
    return
  }
  func.func @transform_0(%arg0: i32) -> (i32, i32) {
    %c0_i32 = arith.constant 0 : i32
    %c0_i32_0 = arith.constant 0 : i32
    %c0_i32_1 = arith.constant 0 : i32
    return %c0_i32, %c0_i32_0 : i32, i32
  }
  func.func @transform_1(%arg0: i32) -> (i32, i32, i32) {
    %c0_i32 = arith.constant 0 : i32
    %c0_i32_0 = arith.constant 0 : i32
    %c0_i32_1 = arith.constant 0 : i32
    return %arg0, %c0_i32, %c0_i32_0 : i32, i32, i32
  }
  func.func @transform_2(%arg0: i32) -> (i32, i32) {
    %c0_i32 = arith.constant 0 : i32
    %c0_i32_0 = arith.constant 0 : i32
    %c0_i32_1 = arith.constant 0 : i32
    return %c0_i32, %c0_i32_0 : i32, i32
  }
}

</mosaic_0001>

<bundles_post_ra>
// kernel: tpu_custom_call.1
= control target key start
LH: loop header
LB: loop body
LE: loop exit
PB: predicated region body
PF: predicated region fallthrough
CT: control target
= control target key end

     0   :  { %7 = vsyncpa [#allocation4], 0  ;;  %s973_s0 = inlined_call_operand.hbm [shape: f32[32,256], index: 0, kind: input, shape index: {}]   ;;  %s974_s1 = inlined_call_operand.hbm [shape: f32[3,32,32], index: 1, kind: input, shape index: {}]   ;;  %s975_s2 = inlined_call_operand.hbm [shape: f32[32,256], index: 2, kind: output, shape index: {}]  }
   0x1   :  { %8 = vsyncpa [#allocation7], 0 }
   0x2   :  { %10 = vsyncpa [#allocation7 + $0x1], 0 }
   0x3   :  { %11 = vsyncpa [#allocation5], 0  ;;  %s806_s9 = smov 0   ;;  %s808_s10 = smov 0  }
   0x4   :  { %s810_s11 = smov 0   ;;  %s812_s12 = smov 0  }
   0x5 LB: > { %s825_s13 = sadd.s32 4294967295, %s779_s12   ;;  %p58_p0 = scmp.ne.s32.totalorder %s771_s10, %s767_s9  ;;  %s779_s12 = sphi %s812_s12, %s991_s12   ;;  %s775_s11 = sphi %s810_s11, %s990_s11   ;;  %s771_s10 = sphi %s808_s10, %s989_s10   ;;  %s767_s9 = sphi %s806_s9, %s988_s9  }
   0x6   : > { %p976_p1 = scmp.eq.s32.totalorder %s825_s13, 0  ;;  %p519_p2 = scmp.ge.s32.totalorder %s779_s12, 1 }
   0x7   : > { %p90_p3 = scmp.lt.s32.totalorder %s779_s12, 4  ;;  %s781_s16 = smov [#allocation3]  }
   0x8   : > { %p834_p5 = por %p976_p1, %p58_p0  ;;  %s102_s17 = sshll.u32 %s781_s16, 4  ;;  %s103_s17 = int_to_ptr.vmem [resolvable:$true] %s102_s17 }
   0x9   : > { %p838_p6 = pnand %p519_p2, %p90_p3  ;;  %s851_s19 = sadd.s32 1, %s779_s12  }
   0xa   : > { %s979_s14 = scalar_select %p834_p5, 1, 0 }
   0xb   : > { %s980_s15 = scalar_select %p838_p6, 1, 0 }
   0xc   : > { %p565_p7 = pneg %p838_p6  ;;  %s45_s20 = sadd.s32 1, %s775_s11 }
   0xd   : > { %s42_s21 = ssub.s32 %s779_s12, %s851_s19  ;;  %s670_s22 = scalar_lea.vmem %s103_s17, 1024 }
   0xe   : > { %p846_p8 = pnand %p565_p7, %p976_p1  ;;  %p671_p10 = scmp.ne.s32.totalorder %s103_s17, %s670_s22 }
   0xf   : > { %p678_p13 = scmp.lt.s32.totalorder %s103_s17, %s103_s17  ;;  %p679_p0 = scmp.lt.s32.totalorder %s670_s22, %s670_s22 }
  0x10   : > { %p661_p9 = pneg %p846_p8 }
  0x11   : > { %p680_p2 = por %p679_p0, %p678_p13 }
  0x12   : > { %p673_p11 = pnand %p671_p10, %p661_p9 }
  0x14   : > { %p674_p12 = pneg %p673_p11 }
  0x16   : > { %p681_p3 = pnand %p680_p2, %p674_p12 }
  0x18   : > { %684 = shalt.err (!%p681_p3)
}
  0x19   : > { %s782_s23 = smov 256   ;;  %s783_s24 = smov 16  }
  0x1a   : > { %568 = dma.hbm_to_vmem [thread:$0]  (!%p846_p8), %s973_s0, 1024, %s103_s17, [#allocation4], %s782_s23, %s782_s23, %s783_s24  }
  0x1b   : > { %p43_p7 = scmp.eq.s32.totalorder %s42_s21, 0  ;;  %p52_p9 = scmp.ne.s32.totalorder %s775_s11, %s771_s10 }
  0x1c   : > { %p53_p10 = scmp.eq.s32.totalorder %s779_s12, 0  ;;  %p574_p11 = scmp.lt.s32.totalorder %s779_s12, 3 }
  0x1d   : > { %s868_s27 = scalar_select %p43_p7, %s775_s11, %s45_s20  }
  0x1e   : > { %p54_p12 = por %p53_p10, %p52_p9  ;;  %s116_s28 = sand.u32 1, %s775_s11  }
  0x1f   : > { %s522_s29 = sshll.u32 %s116_s28, 5  ;;  %s546_s30 = sshll.u32 %s779_s12, 9 }
  0x20   : > { %s875_s5 = scalar_lea.hbm %s974_s1, %s546_s30  ;;  %s120_s6 = scalar_lea.vmem [#allocation6], %s522_s29 }
  0x21   : > { %s127_s7 = sshll.u32 %s120_s6, 4  ;;  %p879_p8 = pnand %p574_p11, %p54_p12  ;;  %s877_s7 = int_to_ptr.vmem [resolvable:$true] %s127_s7 }
  0x22   : > { %s883_s9 = scalar_lea.sflag [#allocation7], %s116_s28  ;;  %s685_s12 = scalar_lea.hbm %s875_s5, 512 }
  0x23   : > { %p686_p13 = scmp.ne.s32.totalorder %s875_s5, %s685_s12  ;;  %p687_p0 = pneg %p879_p8 }
  0x24   : > { %s690_s18 = scalar_lea.hbm %s974_s1, 1536  ;;  %p691_p7 = scmp.lt.s32.totalorder %s875_s5, %s974_s1 }
  0x25   : > { %p688_p2 = pnand %p687_p0, %p686_p13  ;;  %p692_p9 = scmp.lt.s32.totalorder %s690_s18, %s685_s12 }
  0x27   : > { %p689_p3 = pneg %p688_p2  ;;  %p693_p10 = por %p692_p9, %p691_p7 }
  0x29   : > { %p694_p11 = pnand %p693_p10, %p689_p3 }
  0x2b   : > { %697 = shalt.err (!%p694_p11)
}
  0x2c   : > { %s698_s22 = scalar_lea.vmem %s877_s7, 512  ;;  %s784_s23 = smov [#allocation6]  }
  0x2d   : > { %p699_p12 = scmp.ne.s32.totalorder %s877_s7, %s698_s22  ;;  %s703_s24 = sshll.u32 %s784_s23, 4  ;;  %s704_s24 = int_to_ptr.vmem [resolvable:$false] %s703_s24 }
  0x2e   : > { %s705_s25 = scalar_lea.vmem %s704_s24, 1024  ;;  %p706_p2 = scmp.lt.s32.totalorder %s877_s7, %s704_s24 }
  0x2f   : > { %p701_p4 = pnand %p699_p12, %p687_p0  ;;  %p707_p1 = scmp.lt.s32.totalorder %s705_s25, %s698_s22 }
  0x31   : > { %p702_p13 = pneg %p701_p4  ;;  %p708_p5 = por %p707_p1, %p706_p2 }
  0x33   : > { %p709_p6 = pnand %p708_p5, %p702_p13 }
  0x35   : > { %712 = shalt.err (!%p709_p6)
}
  0x36   : > { %s785_s26 = smov 128   ;;  %s786_s28 = smov 8  }
  0x37   : > { %572 = dma.hbm_to_vmem [thread:$0]  (!%p879_p8), %s875_s5, 512, %s877_s7, %s883_s9, %s785_s26, %s785_s26, %s786_s28  }
  0x38   : > { %p983_p0 = scmp.ne.s32.totalorder %s980_s15, 0 }
  0x39   : > { %p984_p4 = scmp.eq.s32.totalorder (!%p983_p0), %s825_s13, 0 }
  0x3a   : > { %139 = sbr.rel (%p983_p0) target bundleno = 661 (0x295), region = 28 }
  0x3f   : > { %754 = dma.done.wait (%p984_p4), [#allocation4], 1024   ;;  %p985_p3 = pmov %p984_p4 }
  0x40   : > { %s145_s29 = sand.u32 1, %s771_s10   ;;  %p986_p1 = scmp.ne.s32.totalorder %s979_s14, 0 }
  0x41   : > { %756 = vsyncadd (%p985_p3), [#allocation4], 4294966272  ;;  %s527_s30 = sshll.u32 %s145_s29, 5  ;;  %s146_s3 = scalar_lea.sflag [#allocation7], %s145_s29 }
  0x42   : > { %s911_s4 = scalar_lea.vmem [#allocation6], %s527_s30 }
  0x43   : > { %758 = dma.done.wait (%p986_p1), %s146_s3, 512  }
  0x44   : > { %760 = vsyncadd (%p986_p1), %s146_s3, 4294966784  ;;  %p987_p5 = scmp.ne.s32.totalorder %s825_s13, 0 }
  0x46   : > { %168 = sbr.rel (%p987_p5) target bundleno = 80 (0x50), region = 40 }
  0x4b   : > { %v169_v0 = vld [vmem:[#allocation3] sm:$0xff]  ;;  %v170_v1 = vld [vmem:[#allocation3 + $0x8] sm:$0xff]  ;;  %v171_v2 = vld [vmem:[#allocation3 + $0x10] sm:$0xff] }
  0x4c   : > { %177 = vst [vmem:[#allocation2 + $0x30] sm:$0xff] %v169_v0  ;;  %178 = vst [vmem:[#allocation2] sm:$0xff] %v170_v1  ;;  %v172_v3 = vld [vmem:[#allocation3 + $0x18] sm:$0xff]  ;;  %v173_v4 = vld [vmem:[#allocation3 + $0x20] sm:$0xff] }
  0x4d   : > { %179 = vst [vmem:[#allocation2 + $0x18] sm:$0xff] %v171_v2  ;;  %v174_v5 = vld [vmem:[#allocation3 + $0x28] sm:$0xff]  ;;  %180 = vst [vmem:[#allocation2 + $0x10] sm:$0xff] %v172_v3  ;;  %v175_v6 = vld [vmem:[#allocation3 + $0x30] sm:$0xff] }
  0x4e   : > { %181 = vst [vmem:[#allocation2 + $0x8] sm:$0xff] %v173_v4  ;;  %182 = vst [vmem:[#allocation2 + $0x20] sm:$0xff] %v174_v5  ;;  %v176_v7 = vld [vmem:[#allocation3 + $0x38] sm:$0xff] }
  0x4f   : > { %183 = vst [vmem:[#allocation2 + $0x28] sm:$0xff] %v175_v6  ;;  %184 = vst [vmem:[#allocation2 + $0x38] sm:$0xff] %v176_v7 }
  0x50 PF: > { %v787_v14 = vmov 0.0   ;;  %v257_v1 = vld [vmem:[%s911_s4] sm:$0xff]  ;;  %vm261_vm0 = vcmask 261120   ;;  %v259_v2 = vld [vmem:[%s911_s4 + $0x10] sm:$0xff]  ;;  %v258_v3 = vld [vmem:[%s911_s4 + $0x8] sm:$0xff]  ;;  %p541_p6 = scmp.ne.s32.totalorder %s825_s13, 2 }
  0x51   : > { %338 = vmatprep.mubr.f32.mxu0 %v787_v14  ;;  %350 = vmatprep.mubr.f32.mxu1 %v787_v14  ;;  %v260_v4 = vld [vmem:[%s911_s4 + $0x18] sm:$0xff] }
  0x53   : > { %v930_v24 = vld [vmem:[#allocation2] sm:$0xff]  ;;  %v932_v25 = vld [vmem:[#allocation2 + $0x30] sm:$0xff] }
  0x54   : > { %v924_v16 = vld [vmem:[#allocation2 + $0x10] sm:$0xff]  ;;  %v926_v17 = vld [vmem:[#allocation2 + $0x18] sm:$0xff]  ;;  %v530_v29 = vmul.f32 -1.702, %v930_v24  ;;  %v529_v30 = vmul.f32 -1.702, %v932_v25 }
  0x55   : > { %v919_v10 = vld [vmem:[#allocation2 + $0x20] sm:$0xff]  ;;  %v189_v15 = vld [vmem:[#allocation2 + $0x8] sm:$0xff]  ;;  %v532_v22 = vmul.f32 -1.702, %v924_v16  ;;  %v531_v23 = vmul.f32 -1.702, %v926_v17 }
  0x56   : > { %v192_v8 = vld [vmem:[#allocation2 + $0x38] sm:$0xff]  ;;  %v191_v9 = vld [vmem:[#allocation2 + $0x28] sm:$0xff]  ;;  %v534_v13 = vmul.f32 -1.702, %v919_v10  ;;  %v533_v21 = vmul.f32 -1.702, %v189_v15 }
  0x57   : > { %v536_v11 = vmul.f32 -1.702, %v192_v8  ;;  %v535_v12 = vmul.f32 -1.702, %v191_v9  ;;  %v215_v27 = vmul.f32 1.442695, %v532_v22 }
  0x58   : > { %v219_v20 = vmul.f32 1.442695, %v534_v13  ;;  %v217_v26 = vmul.f32 1.442695, %v533_v21  ;;  %v213_v28 = vmul.f32 1.442695, %v531_v23 }
  0x59   : > { %v223_v18 = vmul.f32 1.442695, %v536_v11  ;;  %v221_v19 = vmul.f32 1.442695, %v535_v12  ;;  %v211_v31 = vmul.f32 1.442695, %v530_v29 }
  0x5a   : > { %v209_v32 = vmul.f32 1.442695, %v529_v30 }
  0x5b   : > { %619 = vpow2.f32 %v223_v18 }
  0x5c   : > { %621 = vpow2.f32 %v221_v19 }
  0x5d   : > { %623 = vpow2.f32 %v219_v20 }
  0x5e   : > { %625 = vpow2.f32 %v217_v26 }
  0x5f   : > { %627 = vpow2.f32 %v215_v27 }
  0x60   : > { %629 = vpow2.f32 %v213_v28 }
  0x61   : > { %631 = vpow2.f32 %v211_v31 }
  0x62   : > { %633 = vpow2.f32 %v209_v32 }
  0x68   : > { %v620_v33 = vpop.eup %619 }
  0x69   : > { %v622_v34 = vpop.eup %621  ;;  %v232_v35 = vadd.f32 1.0, %v620_v33 }
  0x6a   : > { %v624_v36 = vpop.eup %623  ;;  %v231_v37 = vadd.f32 1.0, %v622_v34 }
  0x6b   : > { %v626_v38 = vpop.eup %625  ;;  %635 = vrcp.f32 %v232_v35  ;;  %v230_v39 = vadd.f32 1.0, %v624_v36 }
  0x6c   : > { %v628_v40 = vpop.eup %627  ;;  %637 = vrcp.f32 %v231_v37  ;;  %v229_v41 = vadd.f32 1.0, %v626_v38 }
  0x6d   : > { %v630_v42 = vpop.eup %629  ;;  %639 = vrcp.f32 %v230_v39  ;;  %v228_v43 = vadd.f32 1.0, %v628_v40 }
  0x6e   : > { %v632_v44 = vpop.eup %631  ;;  %641 = vrcp.f32 %v229_v41  ;;  %v227_v45 = vadd.f32 1.0, %v630_v42 }
  0x6f   : > { %v634_v46 = vpop.eup %633  ;;  %643 = vrcp.f32 %v228_v43  ;;  %v226_v47 = vadd.f32 1.0, %v632_v44 }
  0x70   : > { %645 = vrcp.f32 %v227_v45  ;;  %v225_v48 = vadd.f32 1.0, %v634_v46 }
  0x71   : > { %647 = vrcp.f32 %v226_v47 }
  0x72   : > { %649 = vrcp.f32 %v225_v48 }
  0x78   : > { %v636_v49 = vpop.eup %635 }
  0x79   : > { %v638_v50 = vpop.eup %637  ;;  %v256_v51 = vmul.f32 %v636_v49, %v192_v8 }
  0x7a   : > { %v640_v52 = vpop.eup %639  ;;  %v255_v53 = vmul.f32 %v638_v50, %v191_v9 }
  0x7b   : > { %v642_v54 = vpop.eup %641  ;;  %298 = vmatprep.subr.mxu0 %v256_v51  ;;  %547 = vmatprep.subr.mxu1 %v256_v51  ;;  %v254_v55 = vmul.f32 %v640_v52, %v919_v10 }
  0x7c   : > { %v644_v56 = vpop.eup %643  ;;  %299 = vmatpush1.msra.mxu0 %v255_v53  ;;  %551 = vmatpush1.msra.mxu1 %v255_v53  ;;  %v253_v57 = vmul.f32 %v642_v54, %v189_v15 }
  0x7d   : > { %v646_v58 = vpop.eup %645  ;;  %300 = vmatprep.subr.mxu0 %v254_v55  ;;  %548 = vmatprep.subr.mxu1 %v254_v55  ;;  %v252_v59 = vmul.f32 %v644_v56, %v924_v16 }
  0x7e   : > { %v648_v60 = vpop.eup %647  ;;  %301 = vmatpush1.msra.mxu0 %v253_v57  ;;  %552 = vmatpush1.msra.mxu1 %v253_v57  ;;  %v251_v61 = vmul.f32 %v646_v58, %v926_v17 }
  0x7f   : > { %v650_v62 = vpop.eup %649  ;;  %302 = vmatprep.subr.mxu0 %v252_v59  ;;  %549 = vmatprep.subr.mxu1 %v252_v59  ;;  %v250_v63 = vmul.f32 %v648_v60, %v930_v24 }
  0x80   : > { %303 = vmatpush1.msra.mxu0 %v251_v61  ;;  %553 = vmatpush1.msra.mxu1 %v251_v61  ;;  %v249_v0 = vmul.f32 %v650_v62, %v932_v25 }
  0x81   : > { %304 = vmatprep.subr.mxu0 %v250_v63  ;;  %550 = vmatprep.subr.mxu1 %v250_v63 }
  0x82   : > { %305 = vmatpush1.msra.mxu0 %v249_v0  ;;  %554 = vmatpush1.msra.mxu1 %v249_v0 }
  0x83   : > { %537 = vmatmul.mubr.msk.f32.vlgmr.msra.gmra.mxu0 %vm261_vm0, %v257_v1  ;;  %539 = vmatmul.mubr.msk.f32.vlgmr.msra.gmra.mxu1 %vm261_vm0, %v259_v2 }
  0x84   : > { %344 = vmatprep.mubr.f32.mxu0 %v787_v14  ;;  %356 = vmatprep.mubr.f32.mxu1 %v787_v14 }
  0x87   : > { %538 = vmatmul.mubr.msk.f32.gmra.mxu0 %vm261_vm0, %v258_v3  ;;  %540 = vmatmul.mubr.msk.f32.gmra.mxu1 %vm261_vm0, %v260_v4 }
 0x143   : > { %v340_v5 = vpop.f32.mrf.mxu0  ;;  %v352_v6 = vpop.f32.mrf.mxu1 }
 0x145   : > { %v342_v7 = vpop.f32.mrf.mxu0  ;;  %v354_v8 = vpop.f32.mrf.mxu1 }
 0x146   : > { %v369_v9 = vadd.f32 %v354_v8, %v352_v6  ;;  %v363_v10 = vadd.f32 %v342_v7, %v340_v5 }
 0x147   : > { %v346_v11 = vpop.f32.mrf.mxu0  ;;  %v358_v12 = vpop.f32.mrf.mxu1 }
 0x148   : > { %370 = vadd.xlane.f32.xlu1 %v369_v9  ;;  %364 = vadd.xlane.f32.xlu0 %v363_v10 }
 0x149   : > { %v348_v13 = vpop.f32.mrf.mxu0  ;;  %v360_v15 = vpop.f32.mrf.mxu1 }
 0x14a   : > { %v366_v16 = vadd.f32 %v348_v13, %v346_v11  ;;  %v372_v17 = vadd.f32 %v360_v15, %v358_v12 }
 0x14c   : > { %373 = vadd.xlane.f32.xlu1 %v372_v17  ;;  %367 = vadd.xlane.f32.xlu0 %v366_v16 }
 0x1d1   : > { %v371_v14 = vpop.xlane.xlu1 %370  ;;  %v365_v18 = vpop.xlane.xlu0 %364 }
 0x1d2   : > { %v377_v19 = vmul.f32 0.00390625, %v371_v14  ;;  %v375_v20 = vmul.f32 0.00390625, %v365_v18 }
 0x1d4   : > { %v379_v21 = vsub.f32 %v340_v5, %v375_v20  ;;  %v380_v22 = vsub.f32 %v342_v7, %v375_v20  ;;  %v383_v23 = vsub.f32 %v352_v6, %v377_v19  ;;  %v384_v24 = vsub.f32 %v354_v8, %v377_v19 }
 0x1d5   : > { %v374_v25 = vpop.xlane.xlu1 %373  ;;  %v368_v26 = vpop.xlane.xlu0 %367 }
 0x1d6   : > { %v378_v27 = vmul.f32 0.00390625, %v374_v25  ;;  %v376_v28 = vmul.f32 0.00390625, %v368_v26  ;;  %v387_v29 = vmul.f32 %v379_v21, %v379_v21  ;;  %v388_v30 = vmul.f32 %v380_v22, %v380_v22 }
 0x1d7   : > { %v391_v36 = vmul.f32 %v383_v23, %v383_v23  ;;  %v392_v37 = vmul.f32 %v384_v24, %v384_v24 }
 0x1d8   : > { %v385_v31 = vsub.f32 %v358_v12, %v378_v27  ;;  %v386_v32 = vsub.f32 %v360_v15, %v378_v27  ;;  %v381_v33 = vsub.f32 %v346_v11, %v376_v28  ;;  %v382_v34 = vsub.f32 %v348_v13, %v376_v28 }
 0x1d9   : > { %v395_v35 = vadd.f32 %v388_v30, %v387_v29  ;;  %v401_v43 = vadd.f32 %v392_v37, %v391_v36 }
 0x1da   : > { %v389_v38 = vmul.f32 %v381_v33, %v381_v33  ;;  %v390_v39 = vmul.f32 %v382_v34, %v382_v34  ;;  %v393_v41 = vmul.f32 %v385_v31, %v385_v31  ;;  %v394_v42 = vmul.f32 %v386_v32, %v386_v32 }
 0x1db   : > { %396 = vadd.xlane.f32.xlu0 %v395_v35 }
 0x1dc   : > { %v398_v40 = vadd.f32 %v390_v39, %v389_v38  ;;  %v404_v44 = vadd.f32 %v394_v42, %v393_v41 }
 0x1de   : > { %399 = vadd.xlane.f32.xlu1 %v398_v40 }
 0x1df   : > { %402 = vadd.xlane.f32.xlu0 %v401_v43 }
 0x1e2   : > { %405 = vadd.xlane.f32.xlu1 %v404_v44 }
 0x264   : > { %v397_v45 = vpop.xlane.xlu0 %396 }
 0x265   : > { %v407_v46 = vmul.f32 0.00390625, %v397_v45 }
 0x267   : > { %v411_v47 = vadd.f32 1e-05, %v407_v46  ;;  %v400_v48 = vpop.xlane.xlu1 %399 }
 0x268   : > { %v408_v49 = vmul.f32 0.00390625, %v400_v48  ;;  %v403_v50 = vpop.xlane.xlu0 %402 }
 0x269   : > { %651 = vrsqrt.f32 %v411_v47  ;;  %v409_v51 = vmul.f32 0.00390625, %v403_v50 }
 0x26a   : > { %v412_v52 = vadd.f32 1e-05, %v408_v49 }
 0x26b   : > { %v413_v53 = vadd.f32 1e-05, %v409_v51  ;;  %v406_v54 = vpop.xlane.xlu1 %405 }
 0x26c   : > { %653 = vrsqrt.f32 %v412_v52  ;;  %v410_v55 = vmul.f32 0.00390625, %v406_v54 }
 0x26d   : > { %655 = vrsqrt.f32 %v413_v53 }
 0x26e   : > { %v414_v56 = vadd.f32 1e-05, %v410_v55 }
 0x270   : > { %657 = vrsqrt.f32 %v414_v56 }
 0x276   : > { %v652_v57 = vpop.eup %651 }
 0x277   : > { %v419_v58 = vmul.f32 %v652_v57, %v379_v21  ;;  %v420_v59 = vmul.f32 %v652_v57, %v380_v22 }
 0x279   : > { %v654_v60 = vpop.eup %653  ;;  %427 = vst [vmem:[#allocation2 + $0x30] sm:$0xff] %v419_v58  ;;  %428 = vst [vmem:[#allocation2] sm:$0xff] %v420_v59 }
 0x27a   : > { %v656_v61 = vpop.eup %655  ;;  %v421_v62 = vmul.f32 %v654_v60, %v381_v33  ;;  %v422_v63 = vmul.f32 %v654_v60, %v382_v34 }
 0x27b   : > { %v423_v0 = vmul.f32 %v656_v61, %v383_v23  ;;  %v424_v1 = vmul.f32 %v656_v61, %v384_v24 }
 0x27c   : > { %429 = vst [vmem:[#allocation2 + $0x18] sm:$0xff] %v421_v62  ;;  %430 = vst [vmem:[#allocation2 + $0x10] sm:$0xff] %v422_v63  ;;  %438 = sbr.rel (%p541_p6) target bundleno = 645 (0x285), region = 44 }
 0x27d   : > { %v658_v2 = vpop.eup %657  ;;  %431 = vst [vmem:[#allocation2 + $0x8] sm:$0xff] %v423_v0  ;;  %432 = vst [vmem:[#allocation2 + $0x20] sm:$0xff] %v424_v1 }
 0x27e   : > { %v425_v3 = vmul.f32 %v658_v2, %v385_v31  ;;  %v426_v4 = vmul.f32 %v658_v2, %v386_v32 }
 0x280   : > { %433 = vst [vmem:[#allocation2 + $0x28] sm:$0xff] %v425_v3  ;;  %434 = vst [vmem:[#allocation2 + $0x38] sm:$0xff] %v426_v4 }
 0x281   : > { %439 = vst [vmem:[#allocation8] sm:$0xff] %v419_v58  ;;  %440 = vst [vmem:[#allocation8 + $0x8] sm:$0xff] %v420_v59 }
 0x282   : > { %441 = vst [vmem:[#allocation8 + $0x10] sm:$0xff] %v421_v62  ;;  %442 = vst [vmem:[#allocation8 + $0x18] sm:$0xff] %v422_v63 }
 0x283   : > { %443 = vst [vmem:[#allocation8 + $0x20] sm:$0xff] %v423_v0  ;;  %444 = vst [vmem:[#allocation8 + $0x28] sm:$0xff] %v424_v1 }
 0x284   : > { %445 = vst [vmem:[#allocation8 + $0x30] sm:$0xff] %v425_v3  ;;  %446 = vst [vmem:[#allocation8 + $0x38] sm:$0xff] %v426_v4 }
 0x285 PF: > { %p576_p8 = scmp.eq.s32.totalorder %s825_s13, 2  ;;  %s788_s14 = smov [#allocation8]  }
 0x286   : > { %s453_s15 = sshll.u32 %s788_s14, 4  ;;  %s454_s15 = int_to_ptr.vmem [resolvable:$true] %s453_s15 }
 0x287   : > { %s713_s5 = scalar_lea.vmem %s454_s15, 1024  ;;  %p720_p11 = scmp.lt.s32.totalorder %s454_s15, %s454_s15 }
 0x288   : > { %p714_p7 = scmp.ne.s32.totalorder %s454_s15, %s713_s5  ;;  %p721_p12 = scmp.lt.s32.totalorder %s713_s5, %s713_s5 }
 0x28a   : > { %p715_p9 = pnand %p714_p7, %p576_p8  ;;  %p722_p13 = por %p721_p12, %p720_p11 }
 0x28c   : > { %p716_p10 = pneg %p715_p9 }
 0x28e   : > { %p723_p2 = pnand %p722_p13, %p716_p10 }
 0x290   : > { %726 = shalt.err (!%p723_p2)
}
 0x291   : > { %s789_s6 = smov 256   ;;  %s790_s7 = smov 16  }
 0x292   : > { %562 = dma.vmem_to_hbm [thread:$0]  (%p576_p8), %s454_s15, 1024, %s975_s2, [#allocation5], %s789_s6, %s789_s6, %s790_s7  }
 0x293   : > { %762 = dma.done.wait (%p576_p8), [#allocation5], 1024  }
 0x294   : > { %764 = vsyncadd (%p576_p8), [#allocation5], 4294966272 }
 0x295 PF: > { %p14_p0 = scmp.ge.s32.totalorder %s851_s19, 5   ;;  %s988_s9 = smov %s771_s10 }
 0x296   : > { %s989_s10 = smov %s775_s11  ;;  %s990_s11 = smov %s868_s27 }
 0x297   : > { %s991_s12 = smov %s851_s19  ;;  %16 = sbr.rel (!%p14_p0) target bundleno = 5 (0x5), region = 78 }
 0x29c   :  { %469 = vsyncpa [#allocation4], 1 }
 0x29d   :  { %471 = vsyncpa [#allocation4 + $0x1], 1 }
 0x29e   :  { %472 = vsyncpa [#allocation7], 1 }
 0x29f   :  { %474 = vsyncpa [#allocation7 + $0x1], 1 }
 0x2a0   :  { %475 = vsyncpa [#allocation5], 1 }
 0x2a1   :  { %477 = vsyncpa [#allocation5 + $0x1], 1 }

</bundles_post_ra>
